<compile_context>
chip_gen: v6e
topology: v6e:2x2x1
jax: 0.10.0
libtpu: 0.0.40
codegen_flags: <defaults>
</compile_context>

<pallas_src>
import jax
import jax.numpy as jnp
from jax.experimental import pallas as pl
from jax.experimental.pallas import tpu as pltpu

LN_EPS = 1e-5  # PyTorch nn.LayerNorm default


def _layernorm(v, gamma, beta):
    """Fused-reduction LayerNorm: one pass for sum and sum-of-squares."""
    n = v.shape[-1]
    inv_n = 1.0 / n
    s = jnp.sum(v, axis=-1, keepdims=True)
    s2 = jnp.sum(v * v, axis=-1, keepdims=True)
    mu = s * inv_n
    var = s2 * inv_n - mu * mu
    return (v - mu) * jax.lax.rsqrt(var + LN_EPS) * gamma + beta


def xlstm_block_kernel(
    x_ref, hm_ref, hs_ref,
    wq_ref, wk_ref, wv_ref,            # slstm_qkv split: (H, H) bf16 each
    bq_ref, bk_ref, bv_ref,            # (1, H) f32 each
    w_sg_a_ref, w_sg_b_ref, b_sg_ref,  # slstm_gate split: (H,H) bf16 x2, (1,H) f32
    w_mg_a_ref, w_mg_b_ref, b_mg_ref,  # mlstm_gate split: (H,H) bf16 x2, (1,H) f32
    g_m_ref, be_m_ref,                 # norm_h_m gamma/beta : (1, H) f32
    g_s_ref, be_s_ref,                 # norm_h_s gamma/beta : (1, H) f32
    out_hm_ref, out_hs_ref,
):
    x = x_ref[...]          # (TB, H) f32
    h_m = hm_ref[...]
    h_s = hs_ref[...]

    # ---- sLSTM branch: qkv projection (3 lane-dense K=H matmuls, bf16 MXU) ----
    h_s_bf = h_s.astype(jnp.bfloat16)
    q_s = jnp.dot(h_s_bf, wq_ref[...], preferred_element_type=jnp.float32) + bq_ref[...]
    k_s = jnp.dot(h_s_bf, wk_ref[...], preferred_element_type=jnp.float32) + bk_ref[...]
    v_s = jnp.dot(h_s_bf, wv_ref[...], preferred_element_type=jnp.float32) + bv_ref[...]
    h_s_candidate = jax.nn.sigmoid(q_s * k_s) * v_s   # f32

    # input_size == hidden_size -> x_proj = x (module's else-branch)
    x_proj = x

    # ---- slstm gate over cat([h_s_candidate, h_m]) == two split matmuls ----
    cand_bf = h_s_candidate.astype(jnp.bfloat16)
    hm_bf = h_m.astype(jnp.bfloat16)
    gate_s_lin = (
        jnp.dot(cand_bf, w_sg_a_ref[...], preferred_element_type=jnp.float32)
        + jnp.dot(hm_bf, w_sg_b_ref[...], preferred_element_type=jnp.float32)
        + b_sg_ref[...]
    )
    gate_s = jax.nn.sigmoid(gate_s_lin)
    h_s_new = gate_s * h_s_candidate + (1.0 - gate_s) * h_m

    # ---- mlstm gate over cat([x_proj, h_s_new]) ----
    x_bf = x_proj.astype(jnp.bfloat16)
    hsn_bf = h_s_new.astype(jnp.bfloat16)
    gate_m_lin = (
        jnp.dot(x_bf, w_mg_a_ref[...], preferred_element_type=jnp.float32)
        + jnp.dot(hsn_bf, w_mg_b_ref[...], preferred_element_type=jnp.float32)
        + b_mg_ref[...]
    )
    gate_m = jax.nn.sigmoid(gate_m_lin)
    h_m_new = gate_m * x_proj + (1.0 - gate_m) * h_m

    # ---- Final layer norms (f32) ----
    out_hm_ref[...] = _layernorm(h_m_new, g_m_ref[...], be_m_ref[...])
    out_hs_ref[...] = _layernorm(h_s_new, g_s_ref[...], be_s_ref[...])


def init_params(key, input_size, hidden_size):
    """Deterministic PyTorch-style init (U(-1/sqrt(fan_in), 1/sqrt(fan_in)))."""
    def linear(k, fan_in, fan_out):
        kw, kb = jax.random.split(k)
        bound = 1.0 / jnp.sqrt(fan_in)
        w = jax.random.uniform(kw, (fan_out, fan_in), jnp.float32, -bound, bound)
        b = jax.random.uniform(kb, (fan_out,), jnp.float32, -bound, bound)
        return w, b

    keys = jax.random.split(key, 5)
    params = {}
    # Dead-in-forward params, kept for fidelity to __init__:
    params["mlstm_qkv"] = linear(keys[0], input_size, 3 * input_size)
    params["slstm_proj"] = linear(keys[1], hidden_size, hidden_size)
    # Params that matter:
    params["slstm_qkv"] = linear(keys[2], hidden_size, 3 * hidden_size)
    params["slstm_gate"] = linear(keys[3], 2 * hidden_size, hidden_size)
    params["mlstm_gate"] = linear(keys[4], 2 * hidden_size, hidden_size)
    params["norm_h_m"] = (jnp.ones((hidden_size,), jnp.float32),
                          jnp.zeros((hidden_size,), jnp.float32))
    params["norm_h_s"] = (jnp.ones((hidden_size,), jnp.float32),
                          jnp.zeros((hidden_size,), jnp.float32))
    return params


def prepare_params(params, hidden_size):
    """One-time weight re-layout: transpose to (in,out), split concatenated
    dims, cast matmul weights to bf16, lift 1D vectors to (1, H) f32.
    Call ONCE at model setup, not per forward step."""
    H = hidden_size
    w_sqkv, b_sqkv = params["slstm_qkv"]     # (3H, H), (3H,)
    w_sg, b_sg = params["slstm_gate"]        # (H, 2H), (H,)
    w_mg, b_mg = params["mlstm_gate"]        # (H, 2H), (H,)
    g_m, be_m = params["norm_h_m"]
    g_s, be_s = params["norm_h_s"]

    w_sqkv_t = jnp.transpose(w_sqkv)         # (H, 3H)
    wq = w_sqkv_t[:, 0:H].astype(jnp.bfloat16)
    wk = w_sqkv_t[:, H:2 * H].astype(jnp.bfloat16)
    wv = w_sqkv_t[:, 2 * H:3 * H].astype(jnp.bfloat16)
    bq = b_sqkv[0:H].reshape(1, H)
    bk = b_sqkv[H:2 * H].reshape(1, H)
    bv = b_sqkv[2 * H:3 * H].reshape(1, H)

    w_sg_t = jnp.transpose(w_sg)             # (2H, H)
    w_sg_a = w_sg_t[0:H].astype(jnp.bfloat16)      # acts on h_s_candidate
    w_sg_b = w_sg_t[H:2 * H].astype(jnp.bfloat16)  # acts on h_m
    w_mg_t = jnp.transpose(w_mg)             # (2H, H)
    w_mg_a = w_mg_t[0:H].astype(jnp.bfloat16)      # acts on x_proj
    w_mg_b = w_mg_t[H:2 * H].astype(jnp.bfloat16)  # acts on h_s_new

    prepped = (
        wq, wk, wv, bq, bk, bv,
        w_sg_a, w_sg_b, b_sg.reshape(1, H),
        w_mg_a, w_mg_b, b_mg.reshape(1, H),
        g_m.reshape(1, H), be_m.reshape(1, H),
        g_s.reshape(1, H), be_s.reshape(1, H),
    )
    return jax.tree_util.tree_map(jax.device_put, prepped)


def _pick_batch_tile(B):
    # Biggest power-of-two tile dividing B (caps VMEM use; multiples of 8
    # sublanes; large enough to feed the MXU M dim at real batch sizes).
    for tb in (1024, 512, 256, 128, 64, 32, 16, 8):
        if B % tb == 0:
            return tb
    return B


@jax.jit
def xlstm_block_forward(x, h_m, h_s, prepped):
    B, D = x.shape
    H = h_m.shape[-1]
    assert D == H, "kernel implements the input_size == hidden_size path"

    TB = _pick_batch_tile(B)
    grid = (B // TB,)

    act_spec = pl.BlockSpec((TB, H), lambda i: (i, 0))
    # Weights / biases / LN params: full-array VMEM residents (no blocking, no
    # double buffering; loaded once and reused across all batch tiles).
    full_spec = pl.BlockSpec(memory_space=pltpu.MemorySpace.VMEM)

    out_hm, out_hs = pl.pallas_call(
        xlstm_block_kernel,
        grid=grid,
        out_shape=(
            jax.ShapeDtypeStruct((B, H), jnp.float32),
            jax.ShapeDtypeStruct((B, H), jnp.float32),
        ),
        in_specs=[act_spec, act_spec, act_spec] + [full_spec] * len(prepped),
        out_specs=(act_spec, act_spec),
        compiler_params=pltpu.CompilerParams(
            # batch rows are independent -> shard across TCs on v7x
            dimension_semantics=("parallel",),
            # explicit budget, safe on v7x's 64 MiB VMEM (bf16 weights = 14*H^2 B)
            vmem_limit_bytes=64 * 1024 * 1024,
        ),
    )(x, h_m, h_s, *prepped)
    # TODO(synk): if this block is called per-timestep of a recurrence, fold the
    # time loop into the kernel (T grid axis marked "arbitrary", h_m/h_s carried
    # in VMEM scratch) so weights are streamed from HBM once instead of T times.
    return out_hm, out_hs


def reference_forward(x, h_m, h_s, params):
    """Pure-JAX f32 reference mirroring the PyTorch forward."""
    H = h_m.shape[-1]
    w_sqkv, b_sqkv = params["slstm_qkv"]
    w_sg, b_sg = params["slstm_gate"]
    w_mg, b_mg = params["mlstm_gate"]
    g_m, be_m = params["norm_h_m"]
    g_s, be_s = params["norm_h_s"]

    qkv_s = h_s @ w_sqkv.T + b_sqkv
    q_s, k_s, v_s = qkv_s[:, :H], qkv_s[:, H:2 * H], qkv_s[:, 2 * H:]
    cand = jax.nn.sigmoid(q_s * k_s) * v_s
    x_proj = x
    gate_s = jax.nn.sigmoid(jnp.concatenate([cand, h_m], -1) @ w_sg.T + b_sg)
    h_s_n = gate_s * cand + (1 - gate_s) * h_m
    gate_m = jax.nn.sigmoid(jnp.concatenate([x_proj, h_s_n], -1) @ w_mg.T + b_mg)
    h_m_n = gate_m * x_proj + (1 - gate_m) * h_m

    def ln(v, g, b):
        mu = v.mean(-1, keepdims=True)
        var = ((v - mu) ** 2).mean(-1, keepdims=True)
        return (v - mu) / jnp.sqrt(var + LN_EPS) * g + b

    return ln(h_m_n, g_m, be_m), ln(h_s_n, g_s, be_s)


if __name__ == "__main__":
    B = 16
    input_size = 128    # lane-dense hidden dim (multiple of 128)
    hidden_size = 128

    key = jax.random.PRNGKey(0)
    kx, khm, khs, kp = jax.random.split(key, 4)
    x = jax.random.normal(kx, (B, input_size), jnp.float32)
    h_m = jax.random.normal(khm, (B, hidden_size), jnp.float32)
    h_s = jax.random.normal(khs, (B, hidden_size), jnp.float32)

    params = init_params(kp, input_size, hidden_size)
    prepped = prepare_params(params, hidden_size)   # one-time re-layout + bf16 cast

    out_hm, out_hs = xlstm_block_forward(x, h_m, h_s, prepped)
    jax.block_until_ready((out_hm, out_hs))

    ref_hm, ref_hs = reference_forward(x, h_m, h_s, params)
    # bf16 MXU weights -> loosened tolerance vs. the f32 reference.
    assert jnp.allclose(out_hm, ref_hm, atol=3e-2, rtol=3e-2), \
        f"h_m mismatch, max abs err {jnp.max(jnp.abs(out_hm - ref_hm))}"
    assert jnp.allclose(out_hs, ref_hs, atol=3e-2, rtol=3e-2), \
        f"h_s mismatch, max abs err {jnp.max(jnp.abs(out_hs - ref_hs))}"

    print("KERNEL_OK")
</pallas_src>

<mosaic_0001>
module attributes {stable_mosaic.version = 11 : i64} {
  func.func @xlstm_block_kernel(%arg0: i32, %arg1: memref<16x128xf32, #tpu.memory_space<vmem>>, %arg2: memref<16x128xf32, #tpu.memory_space<vmem>>, %arg3: memref<16x128xf32, #tpu.memory_space<vmem>>, %arg4: memref<128x128xbf16, #tpu.memory_space<vmem>>, %arg5: memref<128x128xbf16, #tpu.memory_space<vmem>>, %arg6: memref<128x128xbf16, #tpu.memory_space<vmem>>, %arg7: memref<1x128xf32, #tpu.memory_space<vmem>>, %arg8: memref<1x128xf32, #tpu.memory_space<vmem>>, %arg9: memref<1x128xf32, #tpu.memory_space<vmem>>, %arg10: memref<128x128xbf16, #tpu.memory_space<vmem>>, %arg11: memref<128x128xbf16, #tpu.memory_space<vmem>>, %arg12: memref<1x128xf32, #tpu.memory_space<vmem>>, %arg13: memref<128x128xbf16, #tpu.memory_space<vmem>>, %arg14: memref<128x128xbf16, #tpu.memory_space<vmem>>, %arg15: memref<1x128xf32, #tpu.memory_space<vmem>>, %arg16: memref<1x128xf32, #tpu.memory_space<vmem>>, %arg17: memref<1x128xf32, #tpu.memory_space<vmem>>, %arg18: memref<1x128xf32, #tpu.memory_space<vmem>>, %arg19: memref<1x128xf32, #tpu.memory_space<vmem>>, %arg20: memref<16x128xf32, #tpu.memory_space<vmem>>, %arg21: memref<16x128xf32, #tpu.memory_space<vmem>>) attributes {dimension_semantics = [#tpu.dimension_semantics<parallel>], iteration_bounds = array<i64: 1>, scalar_prefetch = 0 : i64, scratch_operands = 0 : i64, tpu.core_type = #tpu.core_type<tc>, window_params = [{transform_indices = @transform_0, window_bounds = array<i64: 16, 128>}, {transform_indices = @transform_1, window_bounds = array<i64: 16, 128>}, {transform_indices = @transform_2, window_bounds = array<i64: 16, 128>}, {pipeline_mode = #tpu.pipeline_mode<synchronous>, transform_indices = @transform_3, window_bounds = array<i64: 128, 128>}, {pipeline_mode = #tpu.pipeline_mode<synchronous>, transform_indices = @transform_4, window_bounds = array<i64: 128, 128>}, {pipeline_mode = #tpu.pipeline_mode<synchronous>, transform_indices = @transform_5, window_bounds = array<i64: 128, 128>}, {pipeline_mode = #tpu.pipeline_mode<synchronous>, transform_indices = @transform_6, window_bounds = array<i64: 1, 128>}, {pipeline_mode = #tpu.pipeline_mode<synchronous>, transform_indices = @transform_7, window_bounds = array<i64: 1, 128>}, {pipeline_mode = #tpu.pipeline_mode<synchronous>, transform_indices = @transform_8, window_bounds = array<i64: 1, 128>}, {pipeline_mode = #tpu.pipeline_mode<synchronous>, transform_indices = @transform_9, window_bounds = array<i64: 128, 128>}, {pipeline_mode = #tpu.pipeline_mode<synchronous>, transform_indices = @transform_10, window_bounds = array<i64: 128, 128>}, {pipeline_mode = #tpu.pipeline_mode<synchronous>, transform_indices = @transform_11, window_bounds = array<i64: 1, 128>}, {pipeline_mode = #tpu.pipeline_mode<synchronous>, transform_indices = @transform_12, window_bounds = array<i64: 128, 128>}, {pipeline_mode = #tpu.pipeline_mode<synchronous>, transform_indices = @transform_13, window_bounds = array<i64: 128, 128>}, {pipeline_mode = #tpu.pipeline_mode<synchronous>, transform_indices = @transform_14, window_bounds = array<i64: 1, 128>}, {pipeline_mode = #tpu.pipeline_mode<synchronous>, transform_indices = @transform_15, window_bounds = array<i64: 1, 128>}, {pipeline_mode = #tpu.pipeline_mode<synchronous>, transform_indices = @transform_16, window_bounds = array<i64: 1, 128>}, {pipeline_mode = #tpu.pipeline_mode<synchronous>, transform_indices = @transform_17, window_bounds = array<i64: 1, 128>}, {pipeline_mode = #tpu.pipeline_mode<synchronous>, transform_indices = @transform_18, window_bounds = array<i64: 1, 128>}, {transform_indices = @transform_19, window_bounds = array<i64: 16, 128>}, {transform_indices = @transform_20, window_bounds = array<i64: 16, 128>}]} {
    %c0 = arith.constant 0 : index
    %c0_0 = arith.constant 0 : index
    %0 = vector.load %arg1[%c0, %c0_0] : memref<16x128xf32, #tpu.memory_space<vmem>>, vector<16x128xf32>
    %c0_1 = arith.constant 0 : index
    %c0_2 = arith.constant 0 : index
    %1 = vector.load %arg2[%c0_1, %c0_2] : memref<16x128xf32, #tpu.memory_space<vmem>>, vector<16x128xf32>
    %c0_3 = arith.constant 0 : index
    %c0_4 = arith.constant 0 : index
    %2 = vector.load %arg3[%c0_3, %c0_4] : memref<16x128xf32, #tpu.memory_space<vmem>>, vector<16x128xf32>
    %3 = arith.truncf %2 : vector<16x128xf32> to vector<16x128xbf16>
    %c0_5 = arith.constant 0 : index
    %c0_6 = arith.constant 0 : index
    %4 = vector.load %arg4[%c0_5, %c0_6] : memref<128x128xbf16, #tpu.memory_space<vmem>>, vector<128x128xbf16>
    %cst = arith.constant dense<0.000000e+00> : vector<16x128xf32>
    %5 = tpu.matmul %3, %4, %cst {dimension_numbers = #tpu.dot_dimension_numbers<[1], [0], [0], [1], [0, 0, 1, 1], [], []>} : vector<16x128xbf16>, vector<128x128xbf16>, vector<16x128xf32> -> vector<16x128xf32>
    %c0_7 = arith.constant 0 : index
    %c0_8 = arith.constant 0 : index
    %6 = vector.load %arg7[%c0_7, %c0_8] : memref<1x128xf32, #tpu.memory_space<vmem>>, vector<1x128xf32>
    %7 = vector.broadcast %6 : vector<1x128xf32> to vector<16x128xf32>
    %8 = arith.addf %5, %7 : vector<16x128xf32>
    %c0_9 = arith.constant 0 : index
    %c0_10 = arith.constant 0 : index
    %9 = vector.load %arg5[%c0_9, %c0_10] : memref<128x128xbf16, #tpu.memory_space<vmem>>, vector<128x128xbf16>
    %cst_11 = arith.constant dense<0.000000e+00> : vector<16x128xf32>
    %10 = tpu.matmul %3, %9, %cst_11 {dimension_numbers = #tpu.dot_dimension_numbers<[1], [0], [0], [1], [0, 0, 1, 1], [], []>} : vector<16x128xbf16>, vector<128x128xbf16>, vector<16x128xf32> -> vector<16x128xf32>
    %c0_12 = arith.constant 0 : index
    %c0_13 = arith.constant 0 : index
    %11 = vector.load %arg8[%c0_12, %c0_13] : memref<1x128xf32, #tpu.memory_space<vmem>>, vector<1x128xf32>
    %12 = vector.broadcast %11 : vector<1x128xf32> to vector<16x128xf32>
    %13 = arith.addf %10, %12 : vector<16x128xf32>
    %c0_14 = arith.constant 0 : index
    %c0_15 = arith.constant 0 : index
    %14 = vector.load %arg6[%c0_14, %c0_15] : memref<128x128xbf16, #tpu.memory_space<vmem>>, vector<128x128xbf16>
    %cst_16 = arith.constant dense<0.000000e+00> : vector<16x128xf32>
    %15 = tpu.matmul %3, %14, %cst_16 {dimension_numbers = #tpu.dot_dimension_numbers<[1], [0], [0], [1], [0, 0, 1, 1], [], []>} : vector<16x128xbf16>, vector<128x128xbf16>, vector<16x128xf32> -> vector<16x128xf32>
    %c0_17 = arith.constant 0 : index
    %c0_18 = arith.constant 0 : index
    %16 = vector.load %arg9[%c0_17, %c0_18] : memref<1x128xf32, #tpu.memory_space<vmem>>, vector<1x128xf32>
    %17 = vector.broadcast %16 : vector<1x128xf32> to vector<16x128xf32>
    %18 = arith.addf %15, %17 : vector<16x128xf32>
    %19 = arith.mulf %8, %13 : vector<16x128xf32>
    %20 = arith.negf %19 : vector<16x128xf32>
    %21 = math.exp %20 : vector<16x128xf32>
    %cst_19 = arith.constant 1.000000e+00 : f32
    %22 = vector.broadcast %cst_19 : f32 to vector<16x128xf32>
    %23 = arith.addf %22, %21 : vector<16x128xf32>
    %24 = arith.divf %22, %23 : vector<16x128xf32>
    %25 = arith.mulf %24, %18 : vector<16x128xf32>
    %26 = arith.truncf %25 : vector<16x128xf32> to vector<16x128xbf16>
    %27 = arith.truncf %1 : vector<16x128xf32> to vector<16x128xbf16>
    %c0_20 = arith.constant 0 : index
    %c0_21 = arith.constant 0 : index
    %28 = vector.load %arg10[%c0_20, %c0_21] : memref<128x128xbf16, #tpu.memory_space<vmem>>, vector<128x128xbf16>
    %cst_22 = arith.constant dense<0.000000e+00> : vector<16x128xf32>
    %29 = tpu.matmul %26, %28, %cst_22 {dimension_numbers = #tpu.dot_dimension_numbers<[1], [0], [0], [1], [0, 0, 1, 1], [], []>} : vector<16x128xbf16>, vector<128x128xbf16>, vector<16x128xf32> -> vector<16x128xf32>
    %c0_23 = arith.constant 0 : index
    %c0_24 = arith.constant 0 : index
    %30 = vector.load %arg11[%c0_23, %c0_24] : memref<128x128xbf16, #tpu.memory_space<vmem>>, vector<128x128xbf16>
    %cst_25 = arith.constant dense<0.000000e+00> : vector<16x128xf32>
    %31 = tpu.matmul %27, %30, %cst_25 {dimension_numbers = #tpu.dot_dimension_numbers<[1], [0], [0], [1], [0, 0, 1, 1], [], []>} : vector<16x128xbf16>, vector<128x128xbf16>, vector<16x128xf32> -> vector<16x128xf32>
    %32 = arith.addf %29, %31 : vector<16x128xf32>
    %c0_26 = arith.constant 0 : index
    %c0_27 = arith.constant 0 : index
    %33 = vector.load %arg12[%c0_26, %c0_27] : memref<1x128xf32, #tpu.memory_space<vmem>>, vector<1x128xf32>
    %34 = vector.broadcast %33 : vector<1x128xf32> to vector<16x128xf32>
    %35 = arith.addf %32, %34 : vector<16x128xf32>
    %36 = arith.negf %35 : vector<16x128xf32>
    %37 = math.exp %36 : vector<16x128xf32>
    %cst_28 = arith.constant 1.000000e+00 : f32
    %38 = vector.broadcast %cst_28 : f32 to vector<16x128xf32>
    %39 = arith.addf %38, %37 : vector<16x128xf32>
    %40 = arith.divf %38, %39 : vector<16x128xf32>
    %41 = arith.mulf %40, %25 : vector<16x128xf32>
    %cst_29 = arith.constant 1.000000e+00 : f32
    %42 = vector.broadcast %cst_29 : f32 to vector<16x128xf32>
    %43 = arith.subf %42, %40 : vector<16x128xf32>
    %44 = arith.mulf %43, %1 : vector<16x128xf32>
    %45 = arith.addf %41, %44 : vector<16x128xf32>
    %46 = arith.truncf %0 : vector<16x128xf32> to vector<16x128xbf16>
    %47 = arith.truncf %45 : vector<16x128xf32> to vector<16x128xbf16>
    %c0_30 = arith.constant 0 : index
    %c0_31 = arith.constant 0 : index
    %48 = vector.load %arg13[%c0_30, %c0_31] : memref<128x128xbf16, #tpu.memory_space<vmem>>, vector<128x128xbf16>
    %cst_32 = arith.constant dense<0.000000e+00> : vector<16x128xf32>
    %49 = tpu.matmul %46, %48, %cst_32 {dimension_numbers = #tpu.dot_dimension_numbers<[1], [0], [0], [1], [0, 0, 1, 1], [], []>} : vector<16x128xbf16>, vector<128x128xbf16>, vector<16x128xf32> -> vector<16x128xf32>
    %c0_33 = arith.constant 0 : index
    %c0_34 = arith.constant 0 : index
    %50 = vector.load %arg14[%c0_33, %c0_34] : memref<128x128xbf16, #tpu.memory_space<vmem>>, vector<128x128xbf16>
    %cst_35 = arith.constant dense<0.000000e+00> : vector<16x128xf32>
    %51 = tpu.matmul %47, %50, %cst_35 {dimension_numbers = #tpu.dot_dimension_numbers<[1], [0], [0], [1], [0, 0, 1, 1], [], []>} : vector<16x128xbf16>, vector<128x128xbf16>, vector<16x128xf32> -> vector<16x128xf32>
    %52 = arith.addf %49, %51 : vector<16x128xf32>
    %c0_36 = arith.constant 0 : index
    %c0_37 = arith.constant 0 : index
    %53 = vector.load %arg15[%c0_36, %c0_37] : memref<1x128xf32, #tpu.memory_space<vmem>>, vector<1x128xf32>
    %54 = vector.broadcast %53 : vector<1x128xf32> to vector<16x128xf32>
    %55 = arith.addf %52, %54 : vector<16x128xf32>
    %56 = arith.negf %55 : vector<16x128xf32>
    %57 = math.exp %56 : vector<16x128xf32>
    %cst_38 = arith.constant 1.000000e+00 : f32
    %58 = vector.broadcast %cst_38 : f32 to vector<16x128xf32>
    %59 = arith.addf %58, %57 : vector<16x128xf32>
    %60 = arith.divf %58, %59 : vector<16x128xf32>
    %61 = arith.mulf %60, %0 : vector<16x128xf32>
    %cst_39 = arith.constant 1.000000e+00 : f32
    %62 = vector.broadcast %cst_39 : f32 to vector<16x128xf32>
    %63 = arith.subf %62, %60 : vector<16x128xf32>
    %64 = arith.mulf %63, %1 : vector<16x128xf32>
    %65 = arith.addf %61, %64 : vector<16x128xf32>
    %c0_40 = arith.constant 0 : index
    %c0_41 = arith.constant 0 : index
    %66 = vector.load %arg16[%c0_40, %c0_41] : memref<1x128xf32, #tpu.memory_space<vmem>>, vector<1x128xf32>
    %c0_42 = arith.constant 0 : index
    %c0_43 = arith.constant 0 : index
    %67 = vector.load %arg17[%c0_42, %c0_43] : memref<1x128xf32, #tpu.memory_space<vmem>>, vector<1x128xf32>
    %cst_44 = arith.constant dense<0.000000e+00> : vector<16xf32>
    %68 = vector.multi_reduction <add>, %65, %cst_44 [1] : vector<16x128xf32> to vector<16xf32>
    %69 = vector.shape_cast %68 : vector<16xf32> to vector<16x1xf32>
    %70 = arith.mulf %65, %65 : vector<16x128xf32>
    %cst_45 = arith.constant dense<0.000000e+00> : vector<16xf32>
    %71 = vector.multi_reduction <add>, %70, %cst_45 [1] : vector<16x128xf32> to vector<16xf32>
    %72 = vector.shape_cast %71 : vector<16xf32> to vector<16x1xf32>
    %cst_46 = arith.constant 7.812500e-03 : f32
    %73 = vector.broadcast %cst_46 : f32 to vector<16x1xf32>
    %74 = arith.mulf %69, %73 : vector<16x1xf32>
    %cst_47 = arith.constant 7.812500e-03 : f32
    %75 = vector.broadcast %cst_47 : f32 to vector<16x1xf32>
    %76 = arith.mulf %72, %75 : vector<16x1xf32>
    %77 = arith.mulf %74, %74 : vector<16x1xf32>
    %78 = arith.subf %76, %77 : vector<16x1xf32>
    %79 = vector.broadcast %74 : vector<16x1xf32> to vector<16x128xf32>
    %80 = arith.subf %65, %79 : vector<16x128xf32>
    %cst_48 = arith.constant 9.99999974E-6 : f32
    %81 = vector.broadcast %cst_48 : f32 to vector<16x1xf32>
    %82 = arith.addf %78, %81 : vector<16x1xf32>
    %83 = math.rsqrt %82 : vector<16x1xf32>
    %84 = vector.broadcast %83 : vector<16x1xf32> to vector<16x128xf32>
    %85 = arith.mulf %80, %84 : vector<16x128xf32>
    %86 = vector.broadcast %66 : vector<1x128xf32> to vector<16x128xf32>
    %87 = arith.mulf %85, %86 : vector<16x128xf32>
    %88 = vector.broadcast %67 : vector<1x128xf32> to vector<16x128xf32>
    %89 = arith.addf %87, %88 : vector<16x128xf32>
    %c0_49 = arith.constant 0 : index
    %c0_50 = arith.constant 0 : index
    %90 = vector.load %arg20[%c0_49, %c0_50] : memref<16x128xf32, #tpu.memory_space<vmem>>, vector<16x128xf32>
    tpu.vector_store %arg20[%c0_49, %c0_50], %89 {strides = array<i32>} : memref<16x128xf32, #tpu.memory_space<vmem>>, vector<16x128xf32>,
    %c0_51 = arith.constant 0 : index
    %c0_52 = arith.constant 0 : index
    %91 = vector.load %arg18[%c0_51, %c0_52] : memref<1x128xf32, #tpu.memory_space<vmem>>, vector<1x128xf32>
    %c0_53 = arith.constant 0 : index
    %c0_54 = arith.constant 0 : index
    %92 = vector.load %arg19[%c0_53, %c0_54] : memref<1x128xf32, #tpu.memory_space<vmem>>, vector<1x128xf32>
    %cst_55 = arith.constant dense<0.000000e+00> : vector<16xf32>
    %93 = vector.multi_reduction <add>, %45, %cst_55 [1] : vector<16x128xf32> to vector<16xf32>
    %94 = vector.shape_cast %93 : vector<16xf32> to vector<16x1xf32>
    %95 = arith.mulf %45, %45 : vector<16x128xf32>
    %cst_56 = arith.constant dense<0.000000e+00> : vector<16xf32>
    %96 = vector.multi_reduction <add>, %95, %cst_56 [1] : vector<16x128xf32> to vector<16xf32>
    %97 = vector.shape_cast %96 : vector<16xf32> to vector<16x1xf32>
    %cst_57 = arith.constant 7.812500e-03 : f32
    %98 = vector.broadcast %cst_57 : f32 to vector<16x1xf32>
    %99 = arith.mulf %94, %98 : vector<16x1xf32>
    %cst_58 = arith.constant 7.812500e-03 : f32
    %100 = vector.broadcast %cst_58 : f32 to vector<16x1xf32>
    %101 = arith.mulf %97, %100 : vector<16x1xf32>
    %102 = arith.mulf %99, %99 : vector<16x1xf32>
    %103 = arith.subf %101, %102 : vector<16x1xf32>
    %104 = vector.broadcast %99 : vector<16x1xf32> to vector<16x128xf32>
    %105 = arith.subf %45, %104 : vector<16x128xf32>
    %cst_59 = arith.constant 9.99999974E-6 : f32
    %106 = vector.broadcast %cst_59 : f32 to vector<16x1xf32>
    %107 = arith.addf %103, %106 : vector<16x1xf32>
    %108 = math.rsqrt %107 : vector<16x1xf32>
    %109 = vector.broadcast %108 : vector<16x1xf32> to vector<16x128xf32>
    %110 = arith.mulf %105, %109 : vector<16x128xf32>
    %111 = vector.broadcast %91 : vector<1x128xf32> to vector<16x128xf32>
    %112 = arith.mulf %110, %111 : vector<16x128xf32>
    %113 = vector.broadcast %92 : vector<1x128xf32> to vector<16x128xf32>
    %114 = arith.addf %112, %113 : vector<16x128xf32>
    %c0_60 = arith.constant 0 : index
    %c0_61 = arith.constant 0 : index
    %115 = vector.load %arg21[%c0_60, %c0_61] : memref<16x128xf32, #tpu.memory_space<vmem>>, vector<16x128xf32>
    tpu.vector_store %arg21[%c0_60, %c0_61], %114 {strides = array<i32>} : memref<16x128xf32, #tpu.memory_space<vmem>>, vector<16x128xf32>,
    return
  }
  func.func @transform_0(%arg0: i32) -> (i32, i32) {
    %c0_i32 = arith.constant 0 : i32
    %c0_i32_0 = arith.constant 0 : i32
    return %arg0, %c0_i32 : i32, i32
  }
  func.func @transform_1(%arg0: i32) -> (i32, i32) {
    %c0_i32 = arith.constant 0 : i32
    %c0_i32_0 = arith.constant 0 : i32
    return %arg0, %c0_i32 : i32, i32
  }
  func.func @transform_2(%arg0: i32) -> (i32, i32) {
    %c0_i32 = arith.constant 0 : i32
    %c0_i32_0 = arith.constant 0 : i32
    return %arg0, %c0_i32 : i32, i32
  }
  func.func @transform_3(%arg0: i32) -> (i32, i32) {
    %c0_i32 = arith.constant 0 : i32
    %c0_i32_0 = arith.constant 0 : i32
    %c0_i32_1 = arith.constant 0 : i32
    return %c0_i32, %c0_i32_0 : i32, i32
  }
  func.func @transform_4(%arg0: i32) -> (i32, i32) {
    %c0_i32 = arith.constant 0 : i32
    %c0_i32_0 = arith.constant 0 : i32
    %c0_i32_1 = arith.constant 0 : i32
    return %c0_i32, %c0_i32_0 : i32, i32
  }
  func.func @transform_5(%arg0: i32) -> (i32, i32) {
    %c0_i32 = arith.constant 0 : i32
    %c0_i32_0 = arith.constant 0 : i32
    %c0_i32_1 = arith.constant 0 : i32
    return %c0_i32, %c0_i32_0 : i32, i32
  }
  func.func @transform_6(%arg0: i32) -> (i32, i32) {
    %c0_i32 = arith.constant 0 : i32
    %c0_i32_0 = arith.constant 0 : i32
    %c0_i32_1 = arith.constant 0 : i32
    return %c0_i32, %c0_i32_0 : i32, i32
  }
  func.func @transform_7(%arg0: i32) -> (i32, i32) {
    %c0_i32 = arith.constant 0 : i32
    %c0_i32_0 = arith.constant 0 : i32
    %c0_i32_1 = arith.constant 0 : i32
    return %c0_i32, %c0_i32_0 : i32, i32
  }
  func.func @transform_8(%arg0: i32) -> (i32, i32) {
    %c0_i32 = arith.constant 0 : i32
    %c0_i32_0 = arith.constant 0 : i32
    %c0_i32_1 = arith.constant 0 : i32
    return %c0_i32, %c0_i32_0 : i32, i32
  }
  func.func @transform_9(%arg0: i32) -> (i32, i32) {
    %c0_i32 = arith.constant 0 : i32
    %c0_i32_0 = arith.constant 0 : i32
    %c0_i32_1 = arith.constant 0 : i32
    return %c0_i32, %c0_i32_0 : i32, i32
  }
  func.func @transform_10(%arg0: i32) -> (i32, i32) {
    %c0_i32 = arith.constant 0 : i32
    %c0_i32_0 = arith.constant 0 : i32
    %c0_i32_1 = arith.constant 0 : i32
    return %c0_i32, %c0_i32_0 : i32, i32
  }
  func.func @transform_11(%arg0: i32) -> (i32, i32) {
    %c0_i32 = arith.constant 0 : i32
    %c0_i32_0 = arith.constant 0 : i32
    %c0_i32_1 = arith.constant 0 : i32
    return %c0_i32, %c0_i32_0 : i32, i32
  }
  func.func @transform_12(%arg0: i32) -> (i32, i32) {
    %c0_i32 = arith.constant 0 : i32
    %c0_i32_0 = arith.constant 0 : i32
    %c0_i32_1 = arith.constant 0 : i32
    return %c0_i32, %c0_i32_0 : i32, i32
  }
  func.func @transform_13(%arg0: i32) -> (i32, i32) {
    %c0_i32 = arith.constant 0 : i32
    %c0_i32_0 = arith.constant 0 : i32
    %c0_i32_1 = arith.constant 0 : i32
    return %c0_i32, %c0_i32_0 : i32, i32
  }
  func.func @transform_14(%arg0: i32) -> (i32, i32) {
    %c0_i32 = arith.constant 0 : i32
    %c0_i32_0 = arith.constant 0 : i32
    %c0_i32_1 = arith.constant 0 : i32
    return %c0_i32, %c0_i32_0 : i32, i32
  }
  func.func @transform_15(%arg0: i32) -> (i32, i32) {
    %c0_i32 = arith.constant 0 : i32
    %c0_i32_0 = arith.constant 0 : i32
    %c0_i32_1 = arith.constant 0 : i32
    return %c0_i32, %c0_i32_0 : i32, i32
  }
  func.func @transform_16(%arg0: i32) -> (i32, i32) {
    %c0_i32 = arith.constant 0 : i32
    %c0_i32_0 = arith.constant 0 : i32
    %c0_i32_1 = arith.constant 0 : i32
    return %c0_i32, %c0_i32_0 : i32, i32
  }
  func.func @transform_17(%arg0: i32) -> (i32, i32) {
    %c0_i32 = arith.constant 0 : i32
    %c0_i32_0 = arith.constant 0 : i32
    %c0_i32_1 = arith.constant 0 : i32
    return %c0_i32, %c0_i32_0 : i32, i32
  }
  func.func @transform_18(%arg0: i32) -> (i32, i32) {
    %c0_i32 = arith.constant 0 : i32
    %c0_i32_0 = arith.constant 0 : i32
    %c0_i32_1 = arith.constant 0 : i32
    return %c0_i32, %c0_i32_0 : i32, i32
  }
  func.func @transform_19(%arg0: i32) -> (i32, i32) {
    %c0_i32 = arith.constant 0 : i32
    %c0_i32_0 = arith.constant 0 : i32
    return %arg0, %c0_i32 : i32, i32
  }
  func.func @transform_20(%arg0: i32) -> (i32, i32) {
    %c0_i32 = arith.constant 0 : i32
    %c0_i32_0 = arith.constant 0 : i32
    return %arg0, %c0_i32 : i32, i32
  }
}

</mosaic_0001>

<bundles_post_ra>
// kernel: xlstm_block_forward.1
= control target key start
LH: loop header
LB: loop body
LE: loop exit
PB: predicated region body
PF: predicated region fallthrough
CT: control target
= control target key end

     0   :  { %s2142_s0 = inlined_call_operand.hbm [shape: f32[16,128], index: 0, kind: input, shape index: {}]   ;;  %s2143_s1 = inlined_call_operand.hbm [shape: f32[16,128], index: 1, kind: input, shape index: {}]   ;;  %s2144_s2 = inlined_call_operand.hbm [shape: f32[16,128], index: 2, kind: input, shape index: {}]   ;;  %s2145_s3 = inlined_call_operand.hbm [shape: bf16[128,128], index: 3, kind: input, shape index: {}]   ;;  %s2146_s4 = inlined_call_operand.hbm [shape: bf16[128,128], index: 4, kind: input, shape index: {}]   ;;  %s2147_s5 = inlined_call_operand.hbm [shape: bf16[128,128], index: 5, kind: input, shape index: {}]   ;;  %s2148_s6 = inlined_call_operand.vmem [shape: f32[1,128], index: 6, kind: input, shape index: {}]   ;;  %s2149_s7 = inlined_call_operand.vmem [shape: f32[1,128], index: 7, kind: input, shape index: {}]   ;;  %s2150_s8 = inlined_call_operand.vmem [shape: f32[1,128], index: 8, kind: input, shape index: {}]   ;;  %s2151_s9 = inlined_call_operand.hbm [shape: bf16[128,128], index: 9, kind: input, shape index: {}]   ;;  %s2152_s10 = inlined_call_operand.hbm [shape: bf16[128,128], index: 10, kind: input, shape index: {}]   ;;  %s2153_s11 = inlined_call_operand.vmem [shape: f32[1,128], index: 11, kind: input, shape index: {}]   ;;  %s2154_s12 = inlined_call_operand.hbm [shape: bf16[128,128], index: 12, kind: input, shape index: {}]   ;;  %s2155_s13 = inlined_call_operand.hbm [shape: bf16[128,128], index: 13, kind: input, shape index: {}]   ;;  %s2156_s14 = inlined_call_operand.vmem [shape: f32[1,128], index: 14, kind: input, shape index: {}]   ;;  %s2157_s15 = inlined_call_operand.vmem [shape: f32[1,128], index: 15, kind: input, shape index: {}]   ;;  %s2158_s16 = inlined_call_operand.vmem [shape: f32[1,128], index: 16, kind: input, shape index: {}]   ;;  %s2159_s17 = inlined_call_operand.vmem [shape: f32[1,128], index: 17, kind: input, shape index: {}]   ;;  %s2160_s18 = inlined_call_operand.vmem [shape: f32[1,128], index: 18, kind: input, shape index: {}]   ;;  %s2161_s19 = inlined_call_operand.hbm [shape: f32[16,128], index: 19, kind: output, shape index: {0}]   ;;  %s2162_s20 = inlined_call_operand.hbm [shape: f32[16,128], index: 20, kind: output, shape index: {1}]  }
   0x1   :  { %2163 = sst [smem:[#allocation30_spill]] %s2142_s0 }
   0x2   :  { %2164 = sst [smem:[#allocation31_spill]] %s2143_s1 }
   0x3   :  { %2165 = sst [smem:[#allocation32_spill]] %s2144_s2 }
   0x4   :  { %2166 = sst [smem:[#allocation33_spill]] %s2145_s3 }
   0x5   :  { %2167 = sst [smem:[#allocation34_spill]] %s2146_s4 }
   0x6   :  { %26 = vsyncpa [#allocation3], 0 }
   0x7   :  { %27 = vsyncpa [#allocation6], 0 }
   0x8   :  { %28 = vsyncpa [#allocation9], 0 }
   0x9   :  { %29 = vsyncpa [#allocation12], 0 }
   0xa   :  { %30 = vsyncpa [#allocation15], 0 }
   0xb   :  { %31 = vsyncpa [#allocation18], 0 }
   0xc   :  { %32 = vsyncpa [#allocation4], 0 }
   0xd   :  { %33 = vsyncpa [#allocation21], 0  ;;  %s1810_s1 = smov [#allocation5]   ;;  %s1811_s23 = smov [#allocation8]  }
   0xe   :  { %s51_s22 = sshll.u32 %s1810_s1, 4  ;;  %s75_s24 = sshll.u32 %s1811_s23, 4  ;;  %s52_s22 = int_to_ptr.vmem [resolvable:$true] %s51_s22  ;;  %s76_s24 = int_to_ptr.vmem [resolvable:$true] %s75_s24 }
   0xf   :  { %s1562_s2 = scalar_lea.vmem %s52_s22, 256  ;;  %p1567_p1 = scmp.lt.s32.totalorder %s52_s22, %s52_s22 }
  0x10   :  { %p1563_p0 = scmp.ne.s32.totalorder %s52_s22, %s1562_s2  ;;  %p1568_p2 = scmp.lt.s32.totalorder %s1562_s2, %s1562_s2 }
  0x12   :  { %p1569_p3 = por %p1568_p2, %p1567_p1 }
  0x14   :  { %p1570_p4 = pnand %p1569_p3, %p1563_p0 }
  0x16   :  { %1573 = shalt.err (!%p1570_p4)
}
  0x17   :  { %s1812_s25 = smov 128   ;;  %s1813_s3 = smov 8  }
  0x18   :  { %s2168_s28 = sld [smem:[#allocation31_spill]]  ;;  %s1582_s4 = scalar_lea.vmem %s76_s24, 1024 }
  0x19   :  { %p1583_p5 = scmp.ne.s32.totalorder %s76_s24, %s1582_s4  ;;  %p1587_p6 = scmp.lt.s32.totalorder %s76_s24, %s76_s24 }
  0x1a   :  { %p1588_p7 = scmp.lt.s32.totalorder %s1582_s4, %s1582_s4 }
  0x1c   :  { %p1589_p8 = por %p1588_p7, %p1587_p6 }
  0x1e   :  { %57 = dma.hbm_to_vmem [thread:$0]  %s2168_s28, 256, %s52_s22, [#allocation6], %s1812_s25, %s1812_s25, %s1813_s3  }
  0x1f   :  { %p1590_p9 = pnand %p1589_p8, %p1583_p5 }
  0x21   :  { %1593 = shalt.err (!%p1590_p9)
}
  0x22   :  { %s1814_s29 = smov 64   ;;  %s1815_s30 = smov 4  }
  0x23   :  { %s2169_s1 = sld [smem:[#allocation33_spill]]  ;;  %s1816_s23 = smov [#allocation11]  }
  0x24   :  { %s99_s2 = sshll.u32 %s1816_s23, 4  ;;  %s1817_s26 = smov [#allocation14]   ;;  %s100_s2 = int_to_ptr.vmem [resolvable:$true] %s99_s2 }
  0x25   :  { %s129_s22 = sshll.u32 %s1817_s26, 4  ;;  %s1602_s27 = scalar_lea.vmem %s100_s2, 1024  ;;  %s130_s22 = int_to_ptr.vmem [resolvable:$true] %s129_s22 }
  0x26   :  { %p1603_p10 = scmp.ne.s32.totalorder %s100_s2, %s1602_s27  ;;  %p1607_p11 = scmp.lt.s32.totalorder %s100_s2, %s100_s2 }
  0x27   :  { %p1608_p12 = scmp.lt.s32.totalorder %s1602_s27, %s1602_s27 }
  0x29   :  { %81 = dma.hbm_to_vmem [thread:$0]  %s2169_s1, 1024, %s76_s24, [#allocation9], %s1814_s29, %s1814_s29, %s1815_s30  }
  0x2a   :  { %p1609_p13 = por %p1608_p12, %p1607_p11 }
  0x2c   :  { %p1610_p0 = pnand %p1609_p13, %p1603_p10 }
  0x2e   :  { %1613 = shalt.err (!%p1610_p0)
}
  0x2f   :  { %105 = dma.hbm_to_vmem [thread:$0]  %s2147_s5, 1024, %s100_s2, [#allocation12], %s1814_s29, %s1814_s29, %s1815_s30  }
  0x30   :  { %s1622_s24 = scalar_lea.vmem %s130_s22, 1024  ;;  %p1627_p2 = scmp.lt.s32.totalorder %s130_s22, %s130_s22 }
  0x31   :  { %p1623_p1 = scmp.ne.s32.totalorder %s130_s22, %s1622_s24  ;;  %p1628_p3 = scmp.lt.s32.totalorder %s1622_s24, %s1622_s24 }
  0x33   :  { %p1629_p4 = por %p1628_p3, %p1627_p2 }
  0x35   :  { %p1630_p5 = pnand %p1629_p4, %p1623_p1 }
  0x37   :  { %1633 = shalt.err (!%p1630_p5)
}
  0x38   :  { %135 = dma.hbm_to_vmem [thread:$0]  %s2152_s10, 1024, %s130_s22, [#allocation15], %s1814_s29, %s1814_s29, %s1815_s30  }
  0x39   :  { %s1818_s1 = smov [#allocation2]   ;;  %s1819_s26 = smov [#allocation7]  }
  0x3a   :  { %s39_s23 = sshll.u32 %s1818_s1, 4  ;;  %s63_s27 = sshll.u32 %s1819_s26, 4  ;;  %s40_s23 = int_to_ptr.vmem [resolvable:$true] %s39_s23  ;;  %s64_s27 = int_to_ptr.vmem [resolvable:$true] %s63_s27 }
  0x3b   :  { %s1642_s5 = scalar_lea.vmem %s40_s23, 256  ;;  %p1647_p7 = scmp.lt.s32.totalorder %s40_s23, %s40_s23 }
  0x3c   :  { %p1643_p6 = scmp.ne.s32.totalorder %s40_s23, %s1642_s5  ;;  %p1648_p8 = scmp.lt.s32.totalorder %s1642_s5, %s1642_s5 }
  0x3e   :  { %p1649_p9 = por %p1648_p8, %p1647_p7 }
  0x40   :  { %p1650_p10 = pnand %p1649_p9, %p1643_p6 }
  0x42   :  { %1653 = shalt.err (!%p1650_p10)
}
  0x43   :  { %s2170_s4 = sld [smem:[#allocation30_spill]]  ;;  %s1662_s10 = scalar_lea.vmem %s64_s27, 256 }
  0x44   :  { %p1663_p11 = scmp.ne.s32.totalorder %s64_s27, %s1662_s10  ;;  %p1667_p12 = scmp.lt.s32.totalorder %s64_s27, %s64_s27 }
  0x45   :  { %p1668_p13 = scmp.lt.s32.totalorder %s1662_s10, %s1662_s10 }
  0x47   :  { %p1669_p0 = por %p1668_p13, %p1667_p12 }
  0x49   :  { %45 = dma.hbm_to_vmem [thread:$0]  %s2170_s4, 256, %s40_s23, [#allocation3], %s1812_s25, %s1812_s25, %s1813_s3  }
  0x4a   :  { %p1670_p1 = pnand %p1669_p0, %p1663_p11 }
  0x4c   :  { %1673 = shalt.err (!%p1670_p1)
}
  0x4d   :  { %s2171_s0 = sld [smem:[#allocation32_spill]]  ;;  %s1820_s21 = smov [#allocation10]  }
  0x4e   :  { %s87_s1 = sshll.u32 %s1820_s21, 4  ;;  %s1821_s26 = smov [#allocation13]   ;;  %s88_s1 = int_to_ptr.vmem [resolvable:$true] %s87_s1 }
  0x4f   :  { %s117_s5 = sshll.u32 %s1821_s26, 4  ;;  %s1682_s23 = scalar_lea.vmem %s88_s1, 1024  ;;  %s118_s5 = int_to_ptr.vmem [resolvable:$true] %s117_s5 }
  0x50   :  { %p1683_p2 = scmp.ne.s32.totalorder %s88_s1, %s1682_s23  ;;  %p1687_p3 = scmp.lt.s32.totalorder %s88_s1, %s88_s1 }
  0x51   :  { %p1688_p4 = scmp.lt.s32.totalorder %s1682_s23, %s1682_s23 }
  0x53   :  { %69 = dma.hbm_to_vmem [thread:$0]  %s2171_s0, 256, %s64_s27, [#allocation6], %s1812_s25, %s1812_s25, %s1813_s3  }
  0x54   :  { %p1689_p5 = por %p1688_p4, %p1687_p3 }
  0x56   :  { %p1690_p6 = pnand %p1689_p5, %p1683_p2 }
  0x58   :  { %1693 = shalt.err (!%p1690_p6)
}
  0x59   :  { %s2172_s4 = sld [smem:[#allocation34_spill]]  ;;  %s1702_s27 = scalar_lea.vmem %s118_s5, 1024 }
  0x5a   :  { %p1703_p7 = scmp.ne.s32.totalorder %s118_s5, %s1702_s27  ;;  %p1707_p8 = scmp.lt.s32.totalorder %s118_s5, %s118_s5 }
  0x5b   :  { %p1708_p9 = scmp.lt.s32.totalorder %s1702_s27, %s1702_s27 }
  0x5d   :  { %p1709_p10 = por %p1708_p9, %p1707_p8 }
  0x5f   :  { %93 = dma.hbm_to_vmem [thread:$0]  %s2172_s4, 1024, %s88_s1, [#allocation9], %s1814_s29, %s1814_s29, %s1815_s30  }
  0x60   :  { %p1710_p11 = pnand %p1709_p10, %p1703_p7 }
  0x62   :  { %1713 = shalt.err (!%p1710_p11)
}
  0x63   :  { %123 = dma.hbm_to_vmem [thread:$0]  %s2151_s9, 1024, %s118_s5, [#allocation12], %s1814_s29, %s1814_s29, %s1815_s30  }
  0x64   :  { %s1822_s24 = smov [#allocation16]   ;;  %s1823_s21 = smov [#allocation17]  }
  0x65   :  { %s143_s0 = sshll.u32 %s1822_s24, 4  ;;  %s155_s26 = sshll.u32 %s1823_s21, 4  ;;  %s144_s0 = int_to_ptr.vmem [resolvable:$true] %s143_s0  ;;  %s156_s26 = int_to_ptr.vmem [resolvable:$true] %s155_s26 }
  0x66   :  { %s1722_s1 = scalar_lea.vmem %s144_s0, 1024  ;;  %p1727_p13 = scmp.lt.s32.totalorder %s144_s0, %s144_s0 }
  0x67   :  { %p1723_p12 = scmp.ne.s32.totalorder %s144_s0, %s1722_s1  ;;  %p1728_p0 = scmp.lt.s32.totalorder %s1722_s1, %s1722_s1 }
  0x69   :  { %p1729_p1 = por %p1728_p0, %p1727_p13 }
  0x6b   :  { %p1730_p2 = pnand %p1729_p1, %p1723_p12 }
  0x6d   :  { %1733 = shalt.err (!%p1730_p2)
}
  0x6e   :  { %149 = dma.hbm_to_vmem [thread:$0]  %s2154_s12, 1024, %s144_s0, [#allocation15], %s1814_s29, %s1814_s29, %s1815_s30  }
  0x6f   :  { %s1742_s9 = scalar_lea.vmem %s156_s26, 1024  ;;  %p1747_p4 = scmp.lt.s32.totalorder %s156_s26, %s156_s26 }
  0x70   :  { %p1743_p3 = scmp.ne.s32.totalorder %s156_s26, %s1742_s9  ;;  %p1748_p5 = scmp.lt.s32.totalorder %s1742_s9, %s1742_s9 }
  0x72   :  { %p1749_p6 = por %p1748_p5, %p1747_p4 }
  0x74   :  { %p1750_p7 = pnand %p1749_p6, %p1743_p3 }
  0x76   :  { %1753 = shalt.err (!%p1750_p7)
}
  0x77   :  { %161 = dma.hbm_to_vmem [thread:$0]  %s2155_s13, 1024, %s156_s26, [#allocation18], %s1814_s29, %s1814_s29, %s1815_s30  }
  0x78   :  { %1794 = dma.done.wait [#allocation3], 256  }
  0x79   :  { %1795 = vsyncadd [#allocation3], 4294967040 }
  0x7a   :  { %1796 = dma.done.wait [#allocation6], 512  }
  0x7b   :  { %1797 = vsyncadd [#allocation6], 4294966784 }
  0x7c   :  { %1798 = dma.done.wait [#allocation9], 2048  }
  0x7d   :  { %1799 = vsyncadd [#allocation9], 4294965248 }
  0x7e   :  { %1800 = dma.done.wait [#allocation12], 2048  }
  0x7f   :  { %1801 = vsyncadd [#allocation12], 4294965248 }
  0x80   :  { %1802 = dma.done.wait [#allocation15], 2048  }
  0x81   :  { %1803 = vsyncadd [#allocation15], 4294965248 }
  0x82   :  { %1804 = dma.done.wait [#allocation18], 1024  }
  0x83   :  { %1805 = vsyncadd [#allocation18], 4294966272  ;;  %v1824_v0 = vmov 0.0   ;;  %vm1825_vm0 = vmmov 0   ;;  %v1466_v1 = vld [vmem:[#allocation8 + $0x38] sm:$0xff]   ;;  %v1468_v3 = vld [vmem:[#allocation8 + $0x30] sm:$0xff]  }
  0x84   :  { %1308 = vmatprep.subr.bf16.mxu0 %v1824_v0  ;;  %1328 = vmatprep.subr.bf16.mxu1 %v1824_v0  ;;  %v1467_v2 = vld [vmem:[#allocation10 + $0x38] sm:$0xff]   ;;  %v1469_v4 = vld [vmem:[#allocation10 + $0x30] sm:$0xff]   ;;  %v1470_v5 = vld [vmem:[#allocation8 + $0x28] sm:$0xff]   ;;  %s1827_s23 = smov [#allocation20]  }
  0x85   :  { %1324 = vmatprep.mubr.msk.bf16.mxu0 %vm1825_vm0, %v1824_v0  ;;  %1344 = vmatprep.mubr.msk.bf16.mxu1 %vm1825_vm0, %v1824_v0  ;;  %v1471_v6 = vld [vmem:[#allocation10 + $0x28] sm:$0xff]   ;;  %v1472_v7 = vld [vmem:[#allocation8 + $0x20] sm:$0xff]   ;;  %v1474_v9 = vld [vmem:[#allocation8 + $0x18] sm:$0xff]   ;;  %s1153_s2 = sshll.u32 %s1827_s23, 4  ;;  %s1154_s2 = int_to_ptr.vmem [resolvable:$true] %s1153_s2 }
  0x86   :  { %1309 = vmatpush3.bf16.msra.mxu0 %v1466_v1  ;;  %1329 = vmatpush3.bf16.msra.mxu1 %v1467_v2  ;;  %v1473_v8 = vld [vmem:[#allocation10 + $0x20] sm:$0xff]   ;;  %v1475_v10 = vld [vmem:[#allocation10 + $0x18] sm:$0xff]   ;;  %v1476_v11 = vld [vmem:[#allocation8 + $0x10] sm:$0xff]  }
  0x87   :  { %1310 = vmatprep.subr.bf16.mxu0 %v1824_v0  ;;  %1330 = vmatprep.subr.bf16.mxu1 %v1824_v0  ;;  %v1477_v12 = vld [vmem:[#allocation10 + $0x10] sm:$0xff]   ;;  %v1478_v13 = vld [vmem:[#allocation8 + $0x8] sm:$0xff]   ;;  %v1480_v15 = vld [vmem:[#allocation8] sm:$0xff]  }
  0x88   :  { %v1479_v14 = vld [vmem:[#allocation10 + $0x8] sm:$0xff]   ;;  %v207_v16 = vld [vmem:[#allocation7] sm:$0xff]  ;;  %v208_v17 = vld [vmem:[#allocation7 + $0x8] sm:$0xff] }
  0x89   :  { %v1481_v18 = vld [vmem:[#allocation10] sm:$0xff]   ;;  %v1482_v19 = vld [vmem:[#allocation11 + $0x38] sm:$0xff]   ;;  %v209_v20 = vpack.c.bf16 %v208_v17, %v207_v16  ;;  %v1483_v21 = vld [vmem:[#allocation11 + $0x30] sm:$0xff]  }
  0x8a   :  { %1311 = vmatpush3.bf16.msra.mxu0 %v1468_v3  ;;  %1331 = vmatpush3.bf16.msra.mxu1 %v1469_v4  ;;  %v1484_v22 = vld [vmem:[#allocation11 + $0x28] sm:$0xff]   ;;  %v1485_v23 = vld [vmem:[#allocation11 + $0x20] sm:$0xff]   ;;  %v1486_v24 = vld [vmem:[#allocation11 + $0x18] sm:$0xff]  }
  0x8b   :  { %1312 = vmatprep.subr.bf16.mxu0 %v1824_v0  ;;  %1332 = vmatprep.subr.bf16.mxu1 %v1824_v0  ;;  %v1487_v25 = vld [vmem:[#allocation11 + $0x10] sm:$0xff]   ;;  %v1488_v26 = vld [vmem:[#allocation11 + $0x8] sm:$0xff]   ;;  %v1489_v27 = vld [vmem:[#allocation11] sm:$0xff]  }
  0x8c   :  { %v1490_v28 = vld [vmem:[#allocation14 + $0x38] sm:$0xff]   ;;  %v1491_v29 = vld [vmem:[#allocation14 + $0x30] sm:$0xff]   ;;  %v1493_v31 = vld [vmem:[#allocation14 + $0x28] sm:$0xff]  }
  0x8d   :  { %v1492_v30 = vld [vmem:[#allocation13 + $0x38] sm:$0xff]   ;;  %v1494_v32 = vld [vmem:[#allocation13 + $0x30] sm:$0xff]   ;;  %v1495_v33 = vld [vmem:[#allocation14 + $0x20] sm:$0xff]  }
  0x8e   :  { %1313 = vmatpush3.bf16.msra.mxu0 %v1470_v5  ;;  %1333 = vmatpush3.bf16.msra.mxu1 %v1471_v6  ;;  %v1496_v34 = vld [vmem:[#allocation13 + $0x28] sm:$0xff]   ;;  %v1497_v35 = vld [vmem:[#allocation14 + $0x18] sm:$0xff]   ;;  %v1498_v36 = vld [vmem:[#allocation13 + $0x20] sm:$0xff]  }
  0x8f   :  { %1314 = vmatprep.subr.bf16.mxu0 %v1824_v0  ;;  %1334 = vmatprep.subr.bf16.mxu1 %v1824_v0  ;;  %v1499_v37 = vld [vmem:[#allocation14 + $0x10] sm:$0xff]   ;;  %v1500_v38 = vld [vmem:[#allocation13 + $0x18] sm:$0xff]   ;;  %v1501_v39 = vld [vmem:[#allocation14 + $0x8] sm:$0xff]  }
  0x90   :  { %v1502_v40 = vld [vmem:[#allocation13 + $0x10] sm:$0xff]   ;;  %v1503_v41 = vld [vmem:[#allocation14] sm:$0xff]   ;;  %v1504_v42 = vld [vmem:[#allocation13 + $0x8] sm:$0xff]  }
  0x91   :  { %v2042_v43 = vld [vmem:[#allocation5] sm:$0xff]  ;;  %v2044_v44 = vld [vmem:[#allocation5 + $0x8] sm:$0xff]  ;;  %v1174_v47 = vld [vmem:[%s2148_s6] ss:$0 sm:$0xff] }
  0x92   :  { %1315 = vmatpush3.bf16.msra.mxu0 %v1472_v7  ;;  %1335 = vmatpush3.bf16.msra.mxu1 %v1473_v8  ;;  %v563_v45 = vpack.c.bf16 %v2044_v44, %v2042_v43  ;;  %v1505_v46 = vld [vmem:[#allocation13] sm:$0xff]   ;;  %v1183_v48 = vld [vmem:[%s2149_s7] ss:$0 sm:$0xff] }
  0x93   :  { %1316 = vmatprep.subr.bf16.mxu0 %v1824_v0  ;;  %1336 = vmatprep.subr.bf16.mxu1 %v1824_v0  ;;  %v1192_v8 = vld [vmem:[%s2150_s8] ss:$0 sm:$0xff] }
  0x96   :  { %1317 = vmatpush3.bf16.msra.mxu0 %v1474_v9  ;;  %1337 = vmatpush3.bf16.msra.mxu1 %v1475_v10 }
  0x97   :  { %1318 = vmatprep.subr.bf16.mxu0 %v1824_v0  ;;  %1338 = vmatprep.subr.bf16.mxu1 %v1824_v0 }
  0x9a   :  { %1319 = vmatpush3.bf16.msra.mxu0 %v1476_v11  ;;  %1339 = vmatpush3.bf16.msra.mxu1 %v1477_v12 }
  0x9b   :  { %1320 = vmatprep.subr.bf16.mxu0 %v1824_v0  ;;  %1340 = vmatprep.subr.bf16.mxu1 %v1824_v0 }
  0x9e   :  { %1321 = vmatpush3.bf16.msra.mxu0 %v1478_v13  ;;  %1341 = vmatpush3.bf16.msra.mxu1 %v1479_v14 }
  0x9f   :  { %1322 = vmatprep.subr.bf16.mxu0 %v1824_v0  ;;  %1342 = vmatprep.subr.bf16.mxu1 %v1824_v0 }
  0xa2   :  { %1323 = vmatpush3.bf16.msra.mxu0 %v1480_v15  ;;  %1343 = vmatpush3.bf16.msra.mxu1 %v1481_v18 }
  0xa3   :  { %1348 = vmatprep.subr.bf16.mxu0 %v1824_v0  ;;  %1368 = vmatprep.subr.bf16.mxu1 %v1824_v0 }
  0xa5   :  { %1325 = vmatmul.mubr.bf16.vlgmr.msra.gmra.mxu0 %v209_v20  ;;  %1345 = vmatmul.mubr.bf16.vlgmr.msra.gmra.mxu1 %v209_v20 }
  0xa6   :  { %1349 = vmatpush3.bf16.msra.mxu0 %v1482_v19  ;;  %1364 = vmatprep.mubr.msk.bf16.mxu0 %vm1825_vm0, %v1824_v0 }
  0xa7   :  { %1350 = vmatprep.subr.bf16.mxu0 %v1824_v0  ;;  %1384 = vmatprep.mubr.msk.bf16.mxu1 %vm1825_vm0, %v1824_v0 }
  0xa8   :  { %1369 = vmatpush3.bf16.msra.mxu1 %v1490_v28  ;;  %v1512_v28 = vld [vmem:[#allocation17 + $0x28] sm:$0xff]  }
  0xa9   :  { %1370 = vmatprep.subr.bf16.mxu1 %v1824_v0 }
  0xaa   :  { %1351 = vmatpush3.bf16.msra.mxu0 %v1483_v21 }
  0xab   :  { %1352 = vmatprep.subr.bf16.mxu0 %v1824_v0 }
  0xac   :  { %1371 = vmatpush3.bf16.msra.mxu1 %v1491_v29  ;;  %v1513_v29 = vld [vmem:[#allocation16 + $0x18] sm:$0xff]  }
  0xad   :  { %1372 = vmatprep.subr.bf16.mxu1 %v1824_v0 }
  0xae   :  { %1353 = vmatpush3.bf16.msra.mxu0 %v1484_v22  ;;  %v1506_v22 = vld [vmem:[#allocation16 + $0x38] sm:$0xff]  }
  0xaf   :  { %1354 = vmatprep.subr.bf16.mxu0 %v1824_v0 }
  0xb0   :  { %1373 = vmatpush3.bf16.msra.mxu1 %v1493_v31  ;;  %v1515_v31 = vld [vmem:[#allocation16 + $0x10] sm:$0xff]  }
  0xb1   :  { %1374 = vmatprep.subr.bf16.mxu1 %v1824_v0 }
  0xb2   :  { %1355 = vmatpush3.bf16.msra.mxu0 %v1485_v23  ;;  %v1507_v23 = vld [vmem:[#allocation16 + $0x30] sm:$0xff]  }
  0xb3   :  { %1356 = vmatprep.subr.bf16.mxu0 %v1824_v0 }
  0xb4   :  { %1375 = vmatpush3.bf16.msra.mxu1 %v1495_v33  ;;  %v1517_v33 = vld [vmem:[#allocation16 + $0x8] sm:$0xff]  }
  0xb5   :  { %1376 = vmatprep.subr.bf16.mxu1 %v1824_v0 }
  0xb6   :  { %1357 = vmatpush3.bf16.msra.mxu0 %v1486_v24  ;;  %v1508_v24 = vld [vmem:[#allocation17 + $0x38] sm:$0xff]  }
  0xb7   :  { %1358 = vmatprep.subr.bf16.mxu0 %v1824_v0 }
  0xb8   :  { %1377 = vmatpush3.bf16.msra.mxu1 %v1497_v35  ;;  %v1519_v35 = vld [vmem:[#allocation16] sm:$0xff]  }
  0xb9   :  { %1378 = vmatprep.subr.bf16.mxu1 %v1824_v0 }
  0xba   :  { %1359 = vmatpush3.bf16.msra.mxu0 %v1487_v25  ;;  %v1509_v25 = vld [vmem:[#allocation16 + $0x28] sm:$0xff]  }
  0xbb   :  { %1360 = vmatprep.subr.bf16.mxu0 %v1824_v0 }
  0xbc   :  { %1379 = vmatpush3.bf16.msra.mxu1 %v1499_v37  ;;  %v2083_v37 = vld [vmem:[#allocation2] sm:$0xff] }
  0xbd   :  { %1380 = vmatprep.subr.bf16.mxu1 %v1824_v0 }
  0xbe   :  { %1361 = vmatpush3.bf16.msra.mxu0 %v1488_v26  ;;  %v1510_v26 = vld [vmem:[#allocation17 + $0x30] sm:$0xff]  }
  0xbf   :  { %1362 = vmatprep.subr.bf16.mxu0 %v1824_v0 }
  0xc0   :  { %1381 = vmatpush3.bf16.msra.mxu1 %v1501_v39 }
  0xc1   :  { %1382 = vmatprep.subr.bf16.mxu1 %v1824_v0 }
  0xc2   :  { %1363 = vmatpush3.bf16.msra.mxu0 %v1489_v27  ;;  %v1511_v27 = vld [vmem:[#allocation16 + $0x20] sm:$0xff]  }
  0xc3   :  { %1388 = vmatprep.subr.bf16.mxu0 %v1824_v0 }
  0xc4   :  { %1383 = vmatpush3.bf16.msra.mxu1 %v1503_v41 }
  0xc5   :  { %1365 = vmatmul.mubr.bf16.vlgmr.msra.gmra.mxu0 %v209_v20  ;;  %1408 = vmatprep.subr.bf16.mxu1 %v1824_v0 }
  0xc6   :  { %1404 = vmatprep.mubr.msk.bf16.mxu0 %vm1825_vm0, %v1824_v0  ;;  %1389 = vmatpush3.bf16.msra.mxu0 %v1492_v30  ;;  %v1514_v30 = vld [vmem:[#allocation17 + $0x20] sm:$0xff]  }
  0xc7   :  { %1390 = vmatprep.subr.bf16.mxu0 %v1824_v0  ;;  %1385 = vmatmul.mubr.bf16.vlgmr.msra.gmra.mxu1 %v563_v45 }
  0xc8   :  { %1424 = vmatprep.mubr.msk.bf16.mxu1 %vm1825_vm0, %v1824_v0  ;;  %1409 = vmatpush3.bf16.msra.mxu1 %v1508_v24 }
  0xc9   :  { %1410 = vmatprep.subr.bf16.mxu1 %v1824_v0 }
  0xca   :  { %1391 = vmatpush3.bf16.msra.mxu0 %v1494_v32  ;;  %v1516_v32 = vld [vmem:[#allocation17 + $0x18] sm:$0xff]  }
  0xcb   :  { %1392 = vmatprep.subr.bf16.mxu0 %v1824_v0 }
  0xcc   :  { %1411 = vmatpush3.bf16.msra.mxu1 %v1510_v26 }
  0xcd   :  { %1412 = vmatprep.subr.bf16.mxu1 %v1824_v0 }
  0xce   :  { %1393 = vmatpush3.bf16.msra.mxu0 %v1496_v34  ;;  %v1518_v34 = vld [vmem:[#allocation17 + $0x10] sm:$0xff]  }
  0xcf   :  { %1394 = vmatprep.subr.bf16.mxu0 %v1824_v0 }
  0xd0   :  { %1413 = vmatpush3.bf16.msra.mxu1 %v1512_v28 }
  0xd1   :  { %1414 = vmatprep.subr.bf16.mxu1 %v1824_v0 }
  0xd2   :  { %1395 = vmatpush3.bf16.msra.mxu0 %v1498_v36  ;;  %v1520_v36 = vld [vmem:[#allocation17 + $0x8] sm:$0xff]  }
  0xd3   :  { %1396 = vmatprep.subr.bf16.mxu0 %v1824_v0 }
  0xd4   :  { %1415 = vmatpush3.bf16.msra.mxu1 %v1514_v30 }
  0xd5   :  { %1416 = vmatprep.subr.bf16.mxu1 %v1824_v0 }
  0xd6   :  { %1397 = vmatpush3.bf16.msra.mxu0 %v1500_v38  ;;  %v2085_v38 = vld [vmem:[#allocation2 + $0x8] sm:$0xff] }
  0xd7   :  { %1398 = vmatprep.subr.bf16.mxu0 %v1824_v0  ;;  %v803_v39 = vpack.c.bf16 %v2085_v38, %v2083_v37 }
  0xd8   :  { %1417 = vmatpush3.bf16.msra.mxu1 %v1516_v32 }
  0xd9   :  { %1418 = vmatprep.subr.bf16.mxu1 %v1824_v0 }
  0xda   :  { %1399 = vmatpush3.bf16.msra.mxu0 %v1502_v40  ;;  %v1521_v40 = vld [vmem:[#allocation17] sm:$0xff]  }
  0xdb   :  { %1400 = vmatprep.subr.bf16.mxu0 %v1824_v0 }
  0xdc   :  { %1419 = vmatpush3.bf16.msra.mxu1 %v1518_v34 }
  0xdd   :  { %1420 = vmatprep.subr.bf16.mxu1 %v1824_v0 }
  0xde   :  { %1401 = vmatpush3.bf16.msra.mxu0 %v1504_v42  ;;  %v1219_v42 = vld [vmem:[%s2153_s11] ss:$0 sm:$0xff] }
  0xdf   :  { %1402 = vmatprep.subr.bf16.mxu0 %v1824_v0 }
  0xe0   :  { %1421 = vmatpush3.bf16.msra.mxu1 %v1520_v36 }
  0xe1   :  { %1422 = vmatprep.subr.bf16.mxu1 %v1824_v0 }
  0xe2   :  { %1403 = vmatpush3.bf16.msra.mxu0 %v1505_v46 }
  0xe3   :  { %1428 = vmatprep.subr.bf16.mxu0 %v1824_v0 }
  0xe4   :  { %1423 = vmatpush3.bf16.msra.mxu1 %v1521_v40 }
 0x165   :  { %v315_v49 = vpop.f32.mrf.mxu0  ;;  %v427_v51 = vpop.f32.mrf.mxu1 }
 0x166   :  { %v316_v50 = vadd.f32 %v1174_v47, %v315_v49  ;;  %v428_v52 = vadd.f32 %v1183_v48, %v427_v51 }
 0x167   :  { %v1326_v53 = vpop.f32.mrf.mxu0  ;;  %v1346_v54 = vpop.f32.mrf.mxu1 }
 0x168   :  { %v546_v55 = vmul.f32 %v428_v52, %v316_v50 }
 0x169   :  { %v318_v56 = vpop.f32.mrf.mxu0  ;;  %v430_v58 = vpop.f32.mrf.mxu1 }
 0x16a   :  { %v319_v57 = vadd.f32 %v1174_v47, %v318_v56  ;;  %v1201_v59 = vmul.f32 -1.442695, %v546_v55  ;;  %v431_v60 = vadd.f32 %v1183_v48, %v430_v58 }
 0x16b   :  { %v1327_v61 = vpop.f32.mrf.mxu0  ;;  %v1347_v62 = vpop.f32.mrf.mxu1 }
 0x16c   :  { %1522 = vpow2.f32 %v1201_v59  ;;  %v547_v63 = vmul.f32 %v431_v60, %v319_v57 }
 0x16e   :  { %v1202_v1 = vmul.f32 -1.442695, %v547_v63 }
 0x170   :  { %1524 = vpow2.f32 %v1202_v1 }
 0x179   :  { %v1523_v2 = vpop.eup %1522 }
 0x17a   :  { %v554_v3 = vadd.f32 1.0, %v1523_v2 }
 0x17c   :  { %1526 = vrcp.f32 %v554_v3 }
 0x17d   :  { %v1525_v4 = vpop.eup %1524 }
 0x17e   :  { %v555_v5 = vadd.f32 1.0, %v1525_v4 }
 0x180   :  { %1528 = vrcp.f32 %v555_v5 }
 0x185   :  { %v539_v6 = vpop.f32.mrf.mxu0 }
 0x186   :  { %v540_v10 = vadd.f32 %v1192_v8, %v539_v6 }
 0x187   :  { %v1366_v7 = vpop.f32.mrf.mxu0  ;;  %v678_v18 = vpop.f32.mrf.mxu1 }
 0x189   :  { %v542_v9 = vpop.f32.mrf.mxu0  ;;  %v1527_v12 = vpop.eup %1526 }
 0x18a   :  { %v543_v13 = vadd.f32 %v1192_v8, %v542_v9  ;;  %v2062_v15 = vmul.f32 %v1527_v12, %v540_v10  ;;  %v1386_v19 = vpop.f32.mrf.mxu1  ;;  %v1238_v10 = vld [vmem:[%s2156_s14] ss:$0 sm:$0xff] }
 0x18b   :  { %v1367_v11 = vpop.f32.mrf.mxu0 }
 0x18c   :  { %v681_v20 = vpop.f32.mrf.mxu1 }
 0x18d   :  { %v1529_v14 = vpop.eup %1528 }
 0x18e   :  { %v2064_v16 = vmul.f32 %v1529_v14, %v543_v13  ;;  %v1387_v21 = vpop.f32.mrf.mxu1 }
 0x190   :  { %v562_v17 = vpack.c.bf16 %v2064_v16, %v2062_v15 }
 0x192   :  { %1405 = vmatmul.mubr.bf16.vlgmr.msra.gmra.mxu0 %v562_v17 }
 0x193   :  { %1444 = vmatprep.mubr.msk.bf16.mxu0 %vm1825_vm0, %v1824_v0  ;;  %1429 = vmatpush3.bf16.msra.mxu0 %v1506_v22 }
 0x194   :  { %1430 = vmatprep.subr.bf16.mxu0 %v1824_v0 }
 0x197   :  { %1431 = vmatpush3.bf16.msra.mxu0 %v1507_v23 }
 0x198   :  { %1432 = vmatprep.subr.bf16.mxu0 %v1824_v0 }
 0x19b   :  { %1433 = vmatpush3.bf16.msra.mxu0 %v1509_v25 }
 0x19c   :  { %1434 = vmatprep.subr.bf16.mxu0 %v1824_v0 }
 0x19f   :  { %1435 = vmatpush3.bf16.msra.mxu0 %v1511_v27 }
 0x1a0   :  { %1436 = vmatprep.subr.bf16.mxu0 %v1824_v0 }
 0x1a3   :  { %1437 = vmatpush3.bf16.msra.mxu0 %v1513_v29 }
 0x1a4   :  { %1438 = vmatprep.subr.bf16.mxu0 %v1824_v0 }
 0x1a7   :  { %1439 = vmatpush3.bf16.msra.mxu0 %v1515_v31 }
 0x1a8   :  { %1440 = vmatprep.subr.bf16.mxu0 %v1824_v0 }
 0x1ab   :  { %1441 = vmatpush3.bf16.msra.mxu0 %v1517_v33 }
 0x1ac   :  { %1442 = vmatprep.subr.bf16.mxu0 %v1824_v0 }
 0x1af   :  { %1443 = vmatpush3.bf16.msra.mxu0 %v1519_v35 }
 0x1b2   :  { %1445 = vmatmul.mubr.bf16.vlgmr.msra.gmra.mxu0 %v803_v39 }
 0x252   :  { %v767_v41 = vpop.f32.mrf.mxu0 }
 0x253   :  { %v768_v45 = vadd.f32 %v767_v41, %v678_v18 }
 0x254   :  { %v1406_v46 = vpop.f32.mrf.mxu0 }
 0x255   :  { %v781_v47 = vadd.f32 %v1219_v42, %v768_v45 }
 0x256   :  { %v770_v48 = vpop.f32.mrf.mxu0 }
 0x257   :  { %v1220_v49 = vmul.f32 -1.442695, %v781_v47  ;;  %v771_v50 = vadd.f32 %v770_v48, %v681_v20 }
 0x258   :  { %v1407_v51 = vpop.f32.mrf.mxu0 }
 0x259   :  { %1530 = vpow2.f32 %v1220_v49  ;;  %v782_v52 = vadd.f32 %v1219_v42, %v771_v50 }
 0x25b   :  { %v1221_v53 = vmul.f32 -1.442695, %v782_v52 }
 0x25d   :  { %1532 = vpow2.f32 %v1221_v53 }
 0x266   :  { %v1531_v54 = vpop.eup %1530 }
 0x267   :  { %v789_v0 = vadd.f32 1.0, %v1531_v54 }
 0x269   :  { %1534 = vrcp.f32 %v789_v0 }
 0x26a   :  { %v1533_v55 = vpop.eup %1532 }
 0x26b   :  { %v790_v56 = vadd.f32 1.0, %v1533_v55 }
 0x26d   :  { %1536 = vrcp.f32 %v790_v56 }
 0x272   :  { %v1008_v5 = vpop.f32.mrf.mxu0 }
 0x274   :  { %v1446_v6 = vpop.f32.mrf.mxu0 }
 0x275   :  { %v1241_v6 = vld [vmem:[%s2157_s15] ss:$0 sm:$0xff]  ;;  %s1826_s15 = smov [#allocation19]  }
 0x276   :  { %v1535_v57 = vpop.eup %1534  ;;  %v1011_v7 = vpop.f32.mrf.mxu0  ;;  %s1141_s26 = sshll.u32 %s1826_s15, 4  ;;  %s1142_s26 = int_to_ptr.vmem [resolvable:$true] %s1141_s26 }
 0x277   :  { %v797_v58 = vsub.f32 1.0, %v1535_v57  ;;  %v795_v59 = vmul.f32 %v1535_v57, %v2062_v15  ;;  %p1759_p9 = scmp.lt.s32.totalorder %s1142_s26, %s1142_s26 }
 0x278   :  { %v1447_v8 = vpop.f32.mrf.mxu0 }
 0x279   :  { %v799_v60 = vmul.f32 %v797_v58, %v2042_v43  ;;  %v1242_v8 = vld [vmem:[%s2158_s16] ss:$0 sm:$0xff] }
 0x27a   :  { %v1537_v61 = vpop.eup %1536 }
 0x27b   :  { %v2095_v62 = vadd.f32 %v799_v60, %v795_v59  ;;  %v798_v63 = vsub.f32 1.0, %v1537_v61  ;;  %v796_v1 = vmul.f32 %v1537_v61, %v2064_v16 }
 0x27d   :  { %1092 = vadd.xlane.f32.xlu1 %v2095_v62  ;;  %v800_v2 = vmul.f32 %v798_v63, %v2044_v44 }
 0x27f   :  { %v2100_v3 = vadd.f32 %v800_v2, %v796_v1 }
 0x281   :  { %1094 = vadd.xlane.f32.xlu1 %v2100_v3  ;;  %v804_v4 = vpack.c.bf16 %v2100_v3, %v2095_v62  ;;  %v1097_v36 = vmul.f32 %v2100_v3, %v2100_v3 }
 0x283   :  { %1425 = vmatmul.mubr.bf16.vlgmr.msra.gmra.mxu1 %v804_v4 }
 0x343   :  { %v919_v9 = vpop.f32.mrf.mxu1 }
 0x344   :  { %v1009_v11 = vadd.f32 %v1008_v5, %v919_v9 }
 0x345   :  { %v1426_v12 = vpop.f32.mrf.mxu1 }
 0x346   :  { %v1022_v13 = vadd.f32 %v1238_v10, %v1009_v11 }
 0x347   :  { %v922_v14 = vpop.f32.mrf.mxu1 }
 0x348   :  { %v1239_v15 = vmul.f32 -1.442695, %v1022_v13  ;;  %v1012_v16 = vadd.f32 %v1011_v7, %v922_v14 }
 0x349   :  { %v1427_v17 = vpop.f32.mrf.mxu1 }
 0x34a   :  { %1538 = vpow2.f32 %v1239_v15  ;;  %v1023_v18 = vadd.f32 %v1238_v10, %v1012_v16  ;;  %v1243_v17 = vld [vmem:[%s2159_s17] ss:$0 sm:$0xff]  ;;  %s1754_s17 = scalar_lea.vmem %s1142_s26, 256 }
 0x34b   :  { %p1755_p8 = scmp.ne.s32.totalorder %s1142_s26, %s1754_s17  ;;  %p1760_p10 = scmp.lt.s32.totalorder %s1754_s17, %s1754_s17 }
 0x34c   :  { %v1240_v19 = vmul.f32 -1.442695, %v1023_v18 }
 0x34d   :  { %p1761_p11 = por %p1760_p10, %p1759_p9 }
 0x34e   :  { %1540 = vpow2.f32 %v1240_v19 }
 0x34f   :  { %p1762_p12 = pnand %p1761_p11, %p1755_p8 }
 0x357   :  { %v1539_v20 = vpop.eup %1538 }
 0x358   :  { %v1030_v21 = vadd.f32 1.0, %v1539_v20 }
 0x35a   :  { %1542 = vrcp.f32 %v1030_v21  ;;  %v1244_v21 = vld [vmem:[%s2160_s18] ss:$0 sm:$0xff] }
 0x35b   :  { %v1541_v22 = vpop.eup %1540 }
 0x35c   :  { %v1031_v23 = vadd.f32 1.0, %v1541_v22 }
 0x35e   :  { %1544 = vrcp.f32 %v1031_v23 }
 0x367   :  { %v1543_v24 = vpop.eup %1542 }
 0x368   :  { %v1038_v25 = vsub.f32 1.0, %v1543_v24  ;;  %v1036_v26 = vmul.f32 %v1543_v24, %v2083_v37  ;;  %v1093_v37 = vpop.xlane.xlu1 %1092 }
 0x369   :  { %v1102_v49 = vmul.f32 0.0078125, %v1093_v37 }
 0x36a   :  { %v1040_v27 = vmul.f32 %v1038_v25, %v2042_v43  ;;  %v1096_v43 = vmul.f32 %v2095_v62, %v2095_v62 }
 0x36b   :  { %v1545_v28 = vpop.eup %1544  ;;  %v1106_v57 = vmul.f32 %v1102_v49, %v1102_v49  ;;  %v1110_v15 = vsub.f32 %v2095_v62, %v1102_v49 }
 0x36c   :  { %v1042_v29 = vadd.f32 %v1040_v27, %v1036_v26  ;;  %v1039_v30 = vsub.f32 1.0, %v1545_v28  ;;  %v1037_v31 = vmul.f32 %v1545_v28, %v2085_v38  ;;  %v1095_v38 = vpop.xlane.xlu1 %1094 }
 0x36d   :  { %v1103_v45 = vmul.f32 0.0078125, %v1095_v38 }
 0x36e   :  { %1046 = vadd.xlane.f32.xlu0 %v1042_v29  ;;  %v1041_v32 = vmul.f32 %v1039_v30, %v2044_v44  ;;  %v1050_v33 = vmul.f32 %v1042_v29, %v1042_v29 }
 0x36f   :  { %v1107_v52 = vmul.f32 %v1103_v45, %v1103_v45  ;;  %v1111_v13 = vsub.f32 %v2100_v3, %v1103_v45 }
 0x370   :  { %v1043_v34 = vadd.f32 %v1041_v32, %v1037_v31 }
 0x372   :  { %1052 = vadd.xlane.f32.xlu0 %v1050_v33  ;;  %v1051_v35 = vmul.f32 %v1043_v34, %v1043_v34 }
 0x374   :  { %1054 = vadd.xlane.f32.xlu1 %v1051_v35 }
 0x376   :  { %1048 = vadd.xlane.f32.xlu0 %v1043_v34 }
 0x378   :  { %1100 = vadd.xlane.f32.xlu1 %v1097_v36 }
 0x37a   :  { %1098 = vadd.xlane.f32.xlu0 %v1096_v43 }
 0x3f7   :  { %v1047_v39 = vpop.xlane.xlu0 %1046 }
 0x3f8   :  { %v1056_v40 = vmul.f32 0.0078125, %v1047_v39 }
 0x3fa   :  { %v1060_v44 = vmul.f32 %v1056_v40, %v1056_v40  ;;  %v1064_v4 = vsub.f32 %v1042_v29, %v1056_v40 }
 0x3fb   :  { %v1053_v41 = vpop.xlane.xlu0 %1052 }
 0x3fc   :  { %v1058_v42 = vmul.f32 0.0078125, %v1053_v41 }
 0x3fd   :  { %v1055_v46 = vpop.xlane.xlu1 %1054 }
 0x3fe   :  { %v1062_v47 = vsub.f32 %v1058_v42, %v1060_v44  ;;  %v1059_v54 = vmul.f32 0.0078125, %v1055_v46 }
 0x3ff   :  { %v1049_v48 = vpop.xlane.xlu0 %1048 }
 0x400   :  { %v1066_v50 = vadd.f32 1e-05, %v1062_v47  ;;  %v1057_v51 = vmul.f32 0.0078125, %v1049_v48 }
 0x401   :  { %v1101_v53 = vpop.xlane.xlu1 %1100 }
 0x402   :  { %1546 = vrsqrt.f32 %v1066_v50  ;;  %v1061_v0 = vmul.f32 %v1057_v51, %v1057_v51  ;;  %v1105_v55 = vmul.f32 0.0078125, %v1101_v53  ;;  %v1065_v10 = vsub.f32 %v1043_v34, %v1057_v51 }
 0x403   :  { %v1099_v56 = vpop.xlane.xlu0 %1098 }
 0x404   :  { %v1063_v58 = vsub.f32 %v1059_v54, %v1061_v0  ;;  %v1109_v59 = vsub.f32 %v1105_v55, %v1107_v52  ;;  %v1104_v60 = vmul.f32 0.0078125, %v1099_v56 }
 0x406   :  { %v1067_v61 = vadd.f32 1e-05, %v1063_v58  ;;  %v1113_v63 = vadd.f32 1e-05, %v1109_v59  ;;  %v1108_v1 = vsub.f32 %v1104_v60, %v1106_v57 }
 0x408   :  { %1548 = vrsqrt.f32 %v1067_v61  ;;  %v1112_v2 = vadd.f32 1e-05, %v1108_v1 }
 0x409   :  { %1550 = vrsqrt.f32 %v1113_v63 }
 0x40a   :  { %1552 = vrsqrt.f32 %v1112_v2 }
 0x40f   :  { %v1547_v5 = vpop.eup %1546 }
 0x410   :  { %v1070_v7 = vmul.f32 %v1547_v5, %v1064_v4 }
 0x412   :  { %v1078_v9 = vmul.f32 %v1241_v6, %v1070_v7 }
 0x414   :  { %v1086_v11 = vadd.f32 %v1242_v8, %v1078_v9 }
 0x415   :  { %v1549_v12 = vpop.eup %1548 }
 0x416   :  { %v1551_v14 = vpop.eup %1550  ;;  %v1071_v16 = vmul.f32 %v1549_v12, %v1065_v10  ;;  %1088 = vst [vmem:[#allocation19] sm:$0xff] %v1086_v11 }
 0x417   :  { %v1553_v18 = vpop.eup %1552  ;;  %v1117_v19 = vmul.f32 %v1551_v14, %v1111_v13 }
 0x418   :  { %v1079_v20 = vmul.f32 %v1241_v6, %v1071_v16  ;;  %v1116_v22 = vmul.f32 %v1553_v18, %v1110_v15 }
 0x419   :  { %v1125_v3 = vmul.f32 %v1243_v17, %v1117_v19 }
 0x41a   :  { %v1087_v62 = vadd.f32 %v1242_v8, %v1079_v20  ;;  %v1124_v23 = vmul.f32 %v1243_v17, %v1116_v22 }
 0x41b   :  { %v1133_v24 = vadd.f32 %v1244_v21, %v1125_v3 }
 0x41c   :  { %1089 = vst [vmem:[#allocation19 + $0x8] sm:$0xff] %v1087_v62  ;;  %v1132_v25 = vadd.f32 %v1244_v21, %v1124_v23 }
 0x41d   :  { %1765 = shalt.err (!%p1762_p12)
}
 0x41e   :  { %1147 = dma.vmem_to_hbm [thread:$0]  %s1142_s26, 256, %s2161_s19, [#allocation4], %s1812_s25, %s1812_s25, %s1813_s3   ;;  %1135 = vst [vmem:[#allocation20 + $0x8] sm:$0xff] %v1133_v24  ;;  %1134 = vst [vmem:[#allocation20] sm:$0xff] %v1132_v25 }
 0x41f   :  { %s1774_s5 = scalar_lea.vmem %s1154_s2, 256  ;;  %p1779_p0 = scmp.lt.s32.totalorder %s1154_s2, %s1154_s2 }
 0x420   :  { %p1775_p13 = scmp.ne.s32.totalorder %s1154_s2, %s1774_s5  ;;  %p1780_p1 = scmp.lt.s32.totalorder %s1774_s5, %s1774_s5 }
 0x422   :  { %p1781_p2 = por %p1780_p1, %p1779_p0 }
 0x424   :  { %p1782_p3 = pnand %p1781_p2, %p1775_p13 }
 0x426   :  { %1785 = shalt.err (!%p1782_p3)
}
 0x427   :  { %1159 = dma.vmem_to_hbm [thread:$0]  %s1154_s2, 256, %s2162_s20, [#allocation21], %s1812_s25, %s1812_s25, %s1813_s3  }
 0x428   :  { %1806 = dma.done.wait [#allocation4], 256  }
 0x429   :  { %1807 = vsyncadd [#allocation4], 4294967040 }
 0x42a   :  { %1808 = dma.done.wait [#allocation21], 256  }
 0x42b   :  { %1809 = vsyncadd [#allocation21], 4294967040 }
 0x42c   :  { %1166 = vsyncpa [#allocation3], 1 }
 0x42d   :  { %1167 = vsyncpa [#allocation6], 1 }
 0x42e   :  { %1168 = vsyncpa [#allocation9], 1 }
 0x42f   :  { %1169 = vsyncpa [#allocation12], 1 }
 0x430   :  { %1170 = vsyncpa [#allocation15], 1 }
 0x431   :  { %1171 = vsyncpa [#allocation18], 1 }
 0x432   :  { %1172 = vsyncpa [#allocation4], 1 }
 0x433   :  { %1173 = vsyncpa [#allocation21], 1 }

</bundles_post_ra>
